<compile_context>
chip_gen: v7x
topology: tpu7x:2x2x1
jax: 0.10.0
libtpu: 0.0.40
codegen_flags: <defaults>
</compile_context>

<pallas_src>
import functools

import jax
import jax.numpy as jnp
from jax.experimental import pallas as pl
from jax.experimental.pallas import tpu as pltpu


_LANE_CANDIDATES = (4096, 2048, 1024, 512, 256, 128)  # widest lane dim dividing n
_TARGET_BLOCK_BYTES = 2 << 20                          # ~2 MiB per pipeline block


def _soft_clamp_kernel(x_ref, o_ref, *, max_value):
    # Native-dtype load; compute in f32 vregs; native-dtype store.
    x = x_ref[...].astype(jnp.float32)
    # Guarded argument: unselected elements (and garbage rows of a partial /
    # padded block) see log(1.0) == 0, so no NaN/Inf is ever produced.
    delta = jnp.maximum(x - max_value, 0.0)
    clamped = max_value + jnp.log(1.0 + delta)   # == max_value + log(1 - max_value + x)
    o_ref[...] = jnp.where(x > max_value, clamped, x).astype(o_ref.dtype)


def soft_clamp(x, max_value, *, in_place=False):
    """SoftClamp elementwise via Pallas TPU.

    x: any-shaped float array (e.g. NCHW activations), any float dtype.
    max_value: python float.
    in_place: if True (and x is donatable under jit), the output aliases the
              input HBM buffer, matching the PyTorch in-place semantics.
    """
    max_value = float(max_value)
    orig_shape = x.shape
    n = x.size
    if n == 0:
        return x

    # ---- Lane-dense 2D view; no HBM copies on the common path -------------
    x_flat = x.reshape(-1)                               # contiguous reshape: free
    lane = next((c for c in _LANE_CANDIDATES if n % c == 0), None)
    pad = 0
    if lane is None:
        # Rare path: n not a multiple of 128 -> one pad copy, sliced off below.
        lane = 128
        pad = (-n) % lane
        x_flat = jnp.pad(x_flat, (0, pad))
    rows = (n + pad) // lane
    x2d = x_flat.reshape(rows, lane)

    # ---- Fixed ~2 MiB block + cdiv grid (partial last block is masked) ----
    itemsize = jnp.dtype(x.dtype).itemsize
    row_tile = max(8, (_TARGET_BLOCK_BYTES // (lane * itemsize)) // 8 * 8)
    if row_tile >= rows:
        row_tile = rows                                  # full extent: always legal
    grid = (pl.cdiv(rows, row_tile),)

    kernel = functools.partial(_soft_clamp_kernel, max_value=max_value)
    out2d = pl.pallas_call(
        kernel,
        out_shape=jax.ShapeDtypeStruct((rows, lane), x.dtype),
        grid=grid,
        in_specs=[pl.BlockSpec((row_tile, lane), lambda i: (i, 0))],
        out_specs=pl.BlockSpec((row_tile, lane), lambda i: (i, 0)),
        compiler_params=pltpu.CompilerParams(
            dimension_semantics=("parallel",),           # megacore sharding (v7x)
        ),
        cost_estimate=pl.CostEstimate(
            flops=5 * n,
            transcendentals=n,
            bytes_accessed=2 * n * itemsize,
        ),
        input_output_aliases=({0: 0} if (in_place and pad == 0) else {}),
    )(x2d)

    if pad:
        return out2d.reshape(-1)[:n].reshape(orig_shape)
    return out2d.reshape(orig_shape)                     # free reshape back


if __name__ == "__main__":
    key = jax.random.PRNGKey(0)
    max_value = 1.0

    # Typical NCHW conv-feature input.
    x = jax.random.normal(key, (2, 4, 16, 16), dtype=jnp.float32) * 3.0
    y = soft_clamp(x, max_value)
    jax.block_until_ready(y)
    ref = jnp.where(x > max_value, max_value + jnp.log(1.0 - max_value + x), x)
    assert jnp.allclose(y, ref, atol=1e-5, rtol=1e-5), "f32 mismatch vs reference"

    # Native bf16 path (no wrapper upcast; f32 compute only inside the kernel).
    xb = x.astype(jnp.bfloat16)
    yb = soft_clamp(xb, max_value)
    jax.block_until_ready(yb)
    xb32 = xb.astype(jnp.float32)
    refb = jnp.where(xb32 > max_value, max_value + jnp.log(1.0 - max_value + xb32),
                     xb32).astype(jnp.bfloat16)
    assert jnp.allclose(yb.astype(jnp.float32), refb.astype(jnp.float32),
                        atol=2e-2, rtol=2e-2), "bf16 mismatch vs reference"

    # Odd total size (n % 128 != 0) exercises the pad fallback path.
    x_odd = jax.random.normal(jax.random.PRNGKey(1), (3, 5, 7, 11),
                              dtype=jnp.float32) * 3.0
    y_odd = soft_clamp(x_odd, max_value)
    jax.block_until_ready(y_odd)
    ref_odd = jnp.where(x_odd > max_value,
                        max_value + jnp.log(1.0 - max_value + x_odd), x_odd)
    assert jnp.allclose(y_odd, ref_odd, atol=1e-5, rtol=1e-5), "odd-size mismatch"

    print("KERNEL_OK")
</pallas_src>

<mosaic_0001>
module attributes {stable_mosaic.version = 11 : i64} {
  func.func @_soft_clamp_kernel(%arg0: i32, %arg1: memref<1x2048xf32, #tpu.memory_space<vmem>>, %arg2: memref<1x2048xf32, #tpu.memory_space<vmem>>) attributes {dimension_semantics = [#tpu.dimension_semantics<parallel>], iteration_bounds = array<i64: 1>, scalar_prefetch = 0 : i64, scratch_operands = 0 : i64, tpu.core_type = #tpu.core_type<tc>, window_params = [{transform_indices = @transform_0, window_bounds = array<i64: 1, 2048>}, {transform_indices = @transform_1, window_bounds = array<i64: 1, 2048>}]} {
    %c0 = arith.constant 0 : index
    %c0_0 = arith.constant 0 : index
    %0 = vector.load %arg1[%c0, %c0_0] : memref<1x2048xf32, #tpu.memory_space<vmem>>, vector<1x2048xf32>
    %cst = arith.constant 1.000000e+00 : f32
    %1 = vector.broadcast %cst : f32 to vector<1x2048xf32>
    %2 = arith.subf %0, %1 : vector<1x2048xf32>
    %cst_1 = arith.constant 0.000000e+00 : f32
    %3 = vector.broadcast %cst_1 : f32 to vector<1x2048xf32>
    %4 = arith.maximumf %2, %3 : vector<1x2048xf32>
    %cst_2 = arith.constant 1.000000e+00 : f32
    %5 = vector.broadcast %cst_2 : f32 to vector<1x2048xf32>
    %6 = arith.addf %5, %4 : vector<1x2048xf32>
    %7 = math.log %6 : vector<1x2048xf32>
    %cst_3 = arith.constant 1.000000e+00 : f32
    %8 = vector.broadcast %cst_3 : f32 to vector<1x2048xf32>
    %9 = arith.addf %8, %7 : vector<1x2048xf32>
    %cst_4 = arith.constant 1.000000e+00 : f32
    %10 = vector.broadcast %cst_4 : f32 to vector<1x2048xf32>
    %11 = arith.cmpf ogt, %0, %10 : vector<1x2048xf32>
    %12 = arith.select %11, %9, %0 : vector<1x2048xi1>, vector<1x2048xf32>
    %c0_5 = arith.constant 0 : index
    %c0_6 = arith.constant 0 : index
    %13 = vector.load %arg2[%c0_5, %c0_6] : memref<1x2048xf32, #tpu.memory_space<vmem>>, vector<1x2048xf32>
    tpu.vector_store %arg2[%c0_5, %c0_6], %12 {strides = array<i32>} : memref<1x2048xf32, #tpu.memory_space<vmem>>, vector<1x2048xf32>,
    return
  }
  func.func @transform_0(%arg0: i32) -> (i32, i32) {
    %c0_i32 = arith.constant 0 : i32
    %c0_i32_0 = arith.constant 0 : i32
    return %arg0, %c0_i32 : i32, i32
  }
  func.func @transform_1(%arg0: i32) -> (i32, i32) {
    %c0_i32 = arith.constant 0 : i32
    %c0_i32_0 = arith.constant 0 : i32
    return %arg0, %c0_i32 : i32, i32
  }
}

</mosaic_0001>

<bundles_post_ra>
// kernel: tpu_custom_call.1
= control target key start
LH: loop header
LB: loop body
LE: loop exit
PB: predicated region body
PF: predicated region fallthrough
CT: control target
= control target key end

     0   :  { %6 = vsyncpa [#allocation3], 0  ;;  %s148_s0 = inlined_call_operand.hbm [shape: f32[1,2048], index: 0, kind: input, shape index: {}]   ;;  %s149_s1 = inlined_call_operand.hbm [shape: f32[1,2048], index: 1, kind: output, shape index: {}]  }
   0x1   :  { %7 = vsyncpa [#allocation4], 0  ;;  %s112_s6 = smov [#allocation2]   ;;  %s64_s10 = scalar_lea.hbm %s148_s0, 256 }
   0x2   :  { %s14_s7 = sshll.u32 %s112_s6, 4  ;;  %p65_p0 = scmp.ne.s32.totalorder %s148_s0, %s64_s10  ;;  %s15_s7 = int_to_ptr.vmem [resolvable:$true] %s14_s7 }
   0x3   :  { %p68_p1 = scmp.lt.u32.totalorder %s64_s10, %s148_s0 }
   0x5   :  { %p70_p2 = pnand %p68_p1, %p65_p0 }
   0x7   :  { %73 = shalt.err (!%p70_p2)
}
   0x8   :  { %s74_s15 = scalar_lea.vmem %s15_s7, 256  ;;  %p79_p4 = scmp.lt.s32.totalorder %s15_s7, %s15_s7 }
   0x9   :  { %p75_p3 = scmp.ne.s32.totalorder %s15_s7, %s74_s15  ;;  %p80_p5 = scmp.lt.s32.totalorder %s74_s15, %s74_s15 }
   0xb   :  { %p81_p6 = por %p80_p5, %p79_p4 }
   0xd   :  { %p82_p7 = pnand %p81_p6, %p75_p3 }
   0xf   :  { %85 = shalt.err (!%p82_p7)
}
  0x10   :  { %17 = dma.hbm_to_vmem [thread:$0]  %s148_s0, 256, %s15_s7, [#allocation3]  }
  0x11   :  { %108 = dma.done.wait [#allocation3], 256  }
  0x12   :  { %109 = vsyncadd [#allocation3], 4294967040  ;;  %v21_v0 = vld [vmem:[#allocation2] sm:$0xff]  ;;  %v22_v1 = vld [vmem:[#allocation2 + $0x8] sm:$0xff]  ;;  %s113_s18 = smov [#allocation5]  }
  0x13   :  { %v56_v2 = vadd.f32 -1.0, %v21_v0  ;;  %v57_v3 = vadd.f32 -1.0, %v22_v1  ;;  %vm35_vm0 = vcmp.gt.f32.partialorder %v21_v0, 1.0  ;;  %s47_s19 = sshll.u32 %s113_s18, 4  ;;  %vm36_vm1 = vcmp.gt.f32.partialorder %v22_v1, 1.0  ;;  %s48_s19 = int_to_ptr.vmem [resolvable:$true] %s47_s19 }
  0x14   :  { %s86_s0 = scalar_lea.vmem %s48_s19, 256  ;;  %p91_p9 = scmp.lt.s32.totalorder %s48_s19, %s48_s19 }
  0x15   :  { %v25_v4 = vmax.f32 %v56_v2, 0.0  ;;  %v26_v5 = vmax.f32 %v57_v3, 0.0  ;;  %p87_p8 = scmp.ne.s32.totalorder %s48_s19, %s86_s0  ;;  %p92_p10 = scmp.lt.s32.totalorder %s86_s0, %s86_s0 }
  0x17   :  { %v27_v6 = vadd.f32 1.0, %v25_v4  ;;  %v28_v7 = vadd.f32 1.0, %v26_v5  ;;  %p93_p11 = por %p92_p10, %p91_p9 }
  0x19   :  { %60 = vlog2.f32 %v27_v6  ;;  %p94_p12 = pnand %p93_p11, %p87_p8 }
  0x1a   :  { %62 = vlog2.f32 %v28_v7 }
  0x23   :  { %v61_v8 = vpop.eup %60 }
  0x24   :  { %v63_v9 = vpop.eup %62  ;;  %v30_v10 = vmul.f32 0.6931472, %v61_v8 }
  0x25   :  { %v32_v11 = vmul.f32 0.6931472, %v63_v9 }
  0x26   :  { %v33_v12 = vadd.f32 1.0, %v30_v10 }
  0x27   :  { %v34_v13 = vadd.f32 1.0, %v32_v11 }
  0x28   :  { %v37_v14 = vsel %vm35_vm0, %v33_v12, %v21_v0 }
  0x29   :  { %39 = vst [vmem:[#allocation5] sm:$0xff] %v37_v14  ;;  %v38_v15 = vsel %vm36_vm1, %v34_v13, %v22_v1 }
  0x2a   :  { %40 = vst [vmem:[#allocation5 + $0x8] sm:$0xff] %v38_v15 }
  0x2b   :  { %97 = shalt.err (!%p94_p12)
}
  0x2c   :  { %s98_s22 = scalar_lea.hbm %s149_s1, 256 }
  0x2d   :  { %p99_p13 = scmp.ne.s32.totalorder %s149_s1, %s98_s22  ;;  %p102_p0 = scmp.lt.u32.totalorder %s98_s22, %s149_s1 }
  0x2f   :  { %p104_p1 = pnand %p102_p0, %p99_p13 }
  0x31   :  { %107 = shalt.err (!%p104_p1)
}
  0x32   :  { %50 = dma.vmem_to_hbm [thread:$0]  %s48_s19, 256, %s149_s1, [#allocation4]  }
  0x33   :  { %110 = dma.done.wait [#allocation4], 256  }
  0x34   :  { %111 = vsyncadd [#allocation4], 4294967040 }
  0x35   :  { %54 = vsyncpa [#allocation3], 1 }
  0x36   :  { %55 = vsyncpa [#allocation4], 1 }

</bundles_post_ra>
